<compile_context>
chip_gen: v5e
topology: v5e:2x2
jax: 0.10.0
libtpu: 0.0.40
codegen_flags: <defaults>
</compile_context>

<pallas_src>
import functools

import jax
import jax.numpy as jnp
from jax.experimental import pallas as pl
from jax.experimental.pallas import tpu as pltpu


# --------------------------------------------------------------------------- #
# Kernel
# --------------------------------------------------------------------------- #
def _se_kernel(x_ref, w1_ref, b1_ref, w2_ref, b2_ref, o_ref, *, channels, hw):
    """One batch tile of SqueezeExcitation.

    x_ref  : (TB, C*HW) VMEM, f32 (or bf16)     -- TB batch rows, lane-dense
    w1_ref : (C_r*C,)   SMEM  b1_ref: (C_r,) SMEM
    w2_ref : (2C*C_r,)  SMEM  b2_ref: (2C,)  SMEM
    o_ref  : (TB, C*HW) VMEM
    """
    c = channels
    c_r = b1_ref.shape[0]

    # ---- Global average pool per channel (exact f32 lane reduce) ---------- #
    pooled_cols = []
    for i in range(c):
        chunk = x_ref[:, i * hw:(i + 1) * hw].astype(jnp.float32)     # (TB, HW)
        pooled_cols.append(jnp.mean(chunk, axis=-1, keepdims=True))   # (TB, 1)
    pooled = jnp.concatenate(pooled_cols, axis=-1)                    # (TB, C)
    # Put the batch on the lane axis so the tiny FC stack is lane-dense.
    pooled_t = pooled.T                                               # (C, TB)

    # ---- FC1 + ReLU: scalar-broadcast FMAs over lane-dense (1, TB) rows --- #
    y1_rows = []
    for j in range(c_r):
        acc = pooled_t[0:1, :] * w1_ref[j * c + 0]
        for i in range(1, c):
            acc = acc + pooled_t[i:i + 1, :] * w1_ref[j * c + i]
        y1_rows.append(jnp.maximum(acc + b1_ref[j], 0.0))             # (1, TB)

    # ---- FC2 -------------------------------------------------------------- #
    y2_rows = []
    for k in range(2 * c):
        acc = y1_rows[0] * w2_ref[k * c_r + 0]
        for j in range(1, c_r):
            acc = acc + y1_rows[j] * w2_ref[k * c_r + j]
        y2_rows.append(acc + b2_ref[k])                               # (1, TB)

    sig_rows = [jax.nn.sigmoid(y2_rows[i]) for i in range(c)]         # (1, TB)
    shift_rows = y2_rows[c:]                                          # (1, TB)

    # One small transpose back to batch-on-sublanes column form.
    ss = jnp.concatenate(sig_rows + shift_rows, axis=0)               # (2C, TB)
    ss_t = ss.T                                                       # (TB, 2C)

    # ---- Fused epilogue: lane-dense FMA + unmasked stores ----------------- #
    for i in range(c):
        scale_col = ss_t[:, i:i + 1]                                  # (TB, 1)
        shift_col = ss_t[:, c + i:c + i + 1]                          # (TB, 1)
        chunk = x_ref[:, i * hw:(i + 1) * hw].astype(jnp.float32)     # (TB, HW)
        o_ref[:, i * hw:(i + 1) * hw] = (
            scale_col * chunk + shift_col).astype(o_ref.dtype)


# --------------------------------------------------------------------------- #
# Tile sizing (generation-aware)
# --------------------------------------------------------------------------- #
def _round_up(a, b):
    return ((a + b - 1) // b) * b


def _vmem_capacity_bytes():
    try:
        info = pltpu.get_tpu_info()
        return int(getattr(info, "vmem_capacity_bytes", 64 * 1024 * 1024))
    except Exception:
        return 64 * 1024 * 1024          # conservative (v7x-sized) fallback


def _is_dual_tensorcore():
    try:
        kind = jax.devices()[0].device_kind.lower()
    except Exception:
        return False
    return any(tag in kind for tag in ("v7", "v4", "v5p"))


def _choose_batch_tile(n_rows, row_bytes, dual_core, vmem_cap):
    """Rows (batch elements) per grid step.

    Double-buffered input + output tiles are budgeted against the *physical*
    VMEM capacity of the current chip.  On single-TC chips we take the biggest
    tile that fits (fewest steps); on dual-TC chips we keep several steps so
    both cores get work, without shrinking tiles below ~512 rows.
    """
    n8 = _round_up(max(n_rows, 1), 8)
    budget = int(vmem_cap * 0.4)                         # pipelined buffers
    tb_max = max(8, (budget // (4 * row_bytes)) // 8 * 8)
    steps = pl.cdiv(n8, min(tb_max, n8))
    if dual_core:
        max_steps_by_size = max(1, n8 // 512)
        steps = max(steps, min(8, max_steps_by_size))
    tb = _round_up(pl.cdiv(n8, steps), 8)
    return min(tb, tb_max, n8)


# --------------------------------------------------------------------------- #
# Wrapper
# --------------------------------------------------------------------------- #
def squeeze_excitation(x, w1, b1, w2, b2, out_dtype=None):
    """x: (N, C, H, W).  PyTorch-Linear params: w1 (C/r, C), b1 (C/r,),
    w2 (2C, C/r), b2 (2C,).  Returns sigmoid(scale) * x + shift, (N, C, H, W).
    out_dtype=jnp.bfloat16 halves the HBM write stream (compute stays f32)."""
    n, c, h, w = x.shape
    hw = h * w
    chw = c * hw
    c_r = w1.shape[0]
    out_dtype = x.dtype if out_dtype is None else out_dtype

    # Free layout change: (N, C, H, W) -> (N, C*H*W) is a contiguous merge, so
    # the kernel sees fully dense (sublane x lane) tiles with no 4->8 padding.
    x_flat = x.reshape(n, chw)

    row_bytes = chw * x.dtype.itemsize
    vmem_cap = _vmem_capacity_bytes()
    dual = _is_dual_tensorcore()
    tb = _choose_batch_tile(n, row_bytes, dual, vmem_cap)
    grid_n = pl.cdiv(n, tb)
    n_pad = grid_n * tb
    if n_pad != n:
        # Padded (zero) rows produce garbage scale/shift but are sliced off.
        x_flat = jnp.pad(x_flat, ((0, n_pad - n), (0, 0)))

    # Tiny FC parameters: flattened 1-D f32, resident in SMEM; the kernel
    # reads them as scalars and broadcasts over lane-dense rows.
    w1_flat = w1.reshape(-1).astype(jnp.float32)
    b1_flat = b1.reshape(-1).astype(jnp.float32)
    w2_flat = w2.reshape(-1).astype(jnp.float32)
    b2_flat = b2.reshape(-1).astype(jnp.float32)

    smem = pltpu.MemorySpace.SMEM
    tile_bytes = 4 * tb * row_bytes            # 2 buffers x (in + out) blocks
    vmem_limit = int(min(vmem_cap, max(32 << 20, tile_bytes + (8 << 20))))

    out_flat = pl.pallas_call(
        functools.partial(_se_kernel, channels=c, hw=hw),
        out_shape=jax.ShapeDtypeStruct((n_pad, chw), out_dtype),
        grid_spec=pltpu.PrefetchScalarGridSpec(
            num_scalar_prefetch=0,
            grid=(grid_n,),
            in_specs=[
                pl.BlockSpec((tb, chw), lambda i: (i, 0)),
                pl.BlockSpec(memory_space=smem),
                pl.BlockSpec(memory_space=smem),
                pl.BlockSpec(memory_space=smem),
                pl.BlockSpec(memory_space=smem),
            ],
            out_specs=pl.BlockSpec((tb, chw), lambda i: (i, 0)),
        ),
        compiler_params=pltpu.CompilerParams(
            dimension_semantics=("parallel",),
            vmem_limit_bytes=vmem_limit,
        ),
    )(x_flat, w1_flat, b1_flat, w2_flat, b2_flat)

    return out_flat[:n].reshape(n, c, h, w).astype(out_dtype)


# --------------------------------------------------------------------------- #
# Reference (exact f32, no MXU-precision ambiguity)
# --------------------------------------------------------------------------- #
def _reference(x, w1, b1, w2, b2):
    n, c, h, w = x.shape
    pooled = jnp.mean(x, axis=(2, 3))                                    # (n, c)
    y1 = jnp.maximum(jnp.sum(pooled[:, None, :] * w1[None], axis=-1) + b1, 0.0)
    y2 = jnp.sum(y1[:, None, :] * w2[None], axis=-1) + b2                # (n, 2c)
    scale, shift = y2[:, :c], y2[:, c:]
    return jax.nn.sigmoid(scale)[:, :, None, None] * x + shift[:, :, None, None]


if __name__ == "__main__":
    # Small shapes consistent with the module: channels=4, ratio=2, 16x16.
    N, C, H, W = 2, 4, 16, 16
    RATIO = 2
    C_R = C // RATIO

    key = jax.random.PRNGKey(0)
    kx, kw1, kb1, kw2, kb2 = jax.random.split(key, 5)

    x = jax.random.normal(kx, (N, C, H, W), dtype=jnp.float32)
    # PyTorch Linear parameter shapes: (out_features, in_features).
    w1 = jax.random.normal(kw1, (C_R, C), dtype=jnp.float32) * 0.1
    b1 = jax.random.normal(kb1, (C_R,), dtype=jnp.float32) * 0.1
    w2 = jax.random.normal(kw2, (2 * C, C_R), dtype=jnp.float32) * 0.1
    b2 = jax.random.normal(kb2, (2 * C,), dtype=jnp.float32) * 0.1

    out = squeeze_excitation(x, w1, b1, w2, b2)
    out = jax.block_until_ready(out)

    ref = _reference(x, w1, b1, w2, b2)
    assert out.shape == (N, C, H, W)
    assert jnp.allclose(out, ref, atol=1e-5, rtol=1e-5), "mismatch vs reference"

    print("KERNEL_OK")
</pallas_src>

<mosaic_0001>
module attributes {stable_mosaic.version = 11 : i64} {
  func.func @_se_kernel(%arg0: i32, %arg1: memref<8x1024xf32, #tpu.memory_space<vmem>>, %arg2: memref<8xf32, #tpu.memory_space<smem>>, %arg3: memref<2xf32, #tpu.memory_space<smem>>, %arg4: memref<16xf32, #tpu.memory_space<smem>>, %arg5: memref<8xf32, #tpu.memory_space<smem>>, %arg6: memref<8x1024xf32, #tpu.memory_space<vmem>>) attributes {dimension_semantics = [#tpu.dimension_semantics<parallel>], iteration_bounds = array<i64: 1>, scalar_prefetch = 0 : i64, scratch_operands = 0 : i64, tpu.core_type = #tpu.core_type<tc>, window_params = [{transform_indices = @transform_0, window_bounds = array<i64: 8, 1024>}, {transform_indices = @transform_1, window_bounds = array<i64: 8>}, {transform_indices = @transform_2, window_bounds = array<i64: 2>}, {transform_indices = @transform_3, window_bounds = array<i64: 16>}, {transform_indices = @transform_4, window_bounds = array<i64: 8>}, {transform_indices = @transform_5, window_bounds = array<i64: 8, 1024>}]} {
    %c0 = arith.constant 0 : index
    %c0_0 = arith.constant 0 : index
    %0 = vector.load %arg1[%c0, %c0_0] : memref<8x1024xf32, #tpu.memory_space<vmem>>, vector<8x256xf32>
    %cst = arith.constant dense<0.000000e+00> : vector<8xf32>
    %1 = vector.multi_reduction <add>, %0, %cst [1] : vector<8x256xf32> to vector<8xf32>
    %2 = vector.shape_cast %1 : vector<8xf32> to vector<8x1xf32>
    %cst_1 = arith.constant 2.560000e+02 : f32
    %3 = vector.broadcast %cst_1 : f32 to vector<8x1xf32>
    %4 = arith.divf %2, %3 : vector<8x1xf32>
    %c0_2 = arith.constant 0 : index
    %c256 = arith.constant 256 : index
    %5 = vector.load %arg1[%c0_2, %c256] : memref<8x1024xf32, #tpu.memory_space<vmem>>, vector<8x256xf32>
    %cst_3 = arith.constant dense<0.000000e+00> : vector<8xf32>
    %6 = vector.multi_reduction <add>, %5, %cst_3 [1] : vector<8x256xf32> to vector<8xf32>
    %7 = vector.shape_cast %6 : vector<8xf32> to vector<8x1xf32>
    %cst_4 = arith.constant 2.560000e+02 : f32
    %8 = vector.broadcast %cst_4 : f32 to vector<8x1xf32>
    %9 = arith.divf %7, %8 : vector<8x1xf32>
    %c0_5 = arith.constant 0 : index
    %c512 = arith.constant 512 : index
    %10 = vector.load %arg1[%c0_5, %c512] : memref<8x1024xf32, #tpu.memory_space<vmem>>, vector<8x256xf32>
    %cst_6 = arith.constant dense<0.000000e+00> : vector<8xf32>
    %11 = vector.multi_reduction <add>, %10, %cst_6 [1] : vector<8x256xf32> to vector<8xf32>
    %12 = vector.shape_cast %11 : vector<8xf32> to vector<8x1xf32>
    %cst_7 = arith.constant 2.560000e+02 : f32
    %13 = vector.broadcast %cst_7 : f32 to vector<8x1xf32>
    %14 = arith.divf %12, %13 : vector<8x1xf32>
    %c0_8 = arith.constant 0 : index
    %c768 = arith.constant 768 : index
    %15 = vector.load %arg1[%c0_8, %c768] : memref<8x1024xf32, #tpu.memory_space<vmem>>, vector<8x256xf32>
    %cst_9 = arith.constant dense<0.000000e+00> : vector<8xf32>
    %16 = vector.multi_reduction <add>, %15, %cst_9 [1] : vector<8x256xf32> to vector<8xf32>
    %17 = vector.shape_cast %16 : vector<8xf32> to vector<8x1xf32>
    %cst_10 = arith.constant 2.560000e+02 : f32
    %18 = vector.broadcast %cst_10 : f32 to vector<8x1xf32>
    %19 = arith.divf %17, %18 : vector<8x1xf32>
    %20 = tpu.concatenate %4, %9, %14, %19 in 1 : vector<8x1xf32>, vector<8x1xf32>, vector<8x1xf32>, vector<8x1xf32> -> vector<8x4xf32>
    %21 = tpu.transpose %20, [1, 0] : vector<8x4xf32> -> vector<4x8xf32>
    %22 = vector.extract_strided_slice %21 {offsets = [0, 0], sizes = [1, 8], strides = [1, 1]} : vector<4x8xf32> to vector<1x8xf32>
    %c0_11 = arith.constant 0 : index
    %23 = memref.load %arg2[%c0_11] : memref<8xf32, #tpu.memory_space<smem>>
    %24 = vector.broadcast %23 : f32 to vector<1x8xf32>
    %25 = arith.mulf %22, %24 : vector<1x8xf32>
    %26 = vector.extract_strided_slice %21 {offsets = [1, 0], sizes = [1, 8], strides = [1, 1]} : vector<4x8xf32> to vector<1x8xf32>
    %c1 = arith.constant 1 : index
    %27 = memref.load %arg2[%c1] : memref<8xf32, #tpu.memory_space<smem>>
    %28 = vector.broadcast %27 : f32 to vector<1x8xf32>
    %29 = arith.mulf %26, %28 : vector<1x8xf32>
    %30 = arith.addf %25, %29 : vector<1x8xf32>
    %31 = vector.extract_strided_slice %21 {offsets = [2, 0], sizes = [1, 8], strides = [1, 1]} : vector<4x8xf32> to vector<1x8xf32>
    %c2 = arith.constant 2 : index
    %32 = memref.load %arg2[%c2] : memref<8xf32, #tpu.memory_space<smem>>
    %33 = vector.broadcast %32 : f32 to vector<1x8xf32>
    %34 = arith.mulf %31, %33 : vector<1x8xf32>
    %35 = arith.addf %30, %34 : vector<1x8xf32>
    %36 = vector.extract_strided_slice %21 {offsets = [3, 0], sizes = [1, 8], strides = [1, 1]} : vector<4x8xf32> to vector<1x8xf32>
    %c3 = arith.constant 3 : index
    %37 = memref.load %arg2[%c3] : memref<8xf32, #tpu.memory_space<smem>>
    %38 = vector.broadcast %37 : f32 to vector<1x8xf32>
    %39 = arith.mulf %36, %38 : vector<1x8xf32>
    %40 = arith.addf %35, %39 : vector<1x8xf32>
    %c0_12 = arith.constant 0 : index
    %41 = memref.load %arg3[%c0_12] : memref<2xf32, #tpu.memory_space<smem>>
    %42 = vector.broadcast %41 : f32 to vector<1x8xf32>
    %43 = arith.addf %40, %42 : vector<1x8xf32>
    %cst_13 = arith.constant 0.000000e+00 : f32
    %44 = vector.broadcast %cst_13 : f32 to vector<1x8xf32>
    %45 = arith.maximumf %43, %44 : vector<1x8xf32>
    %46 = vector.extract_strided_slice %21 {offsets = [0, 0], sizes = [1, 8], strides = [1, 1]} : vector<4x8xf32> to vector<1x8xf32>
    %c4 = arith.constant 4 : index
    %47 = memref.load %arg2[%c4] : memref<8xf32, #tpu.memory_space<smem>>
    %48 = vector.broadcast %47 : f32 to vector<1x8xf32>
    %49 = arith.mulf %46, %48 : vector<1x8xf32>
    %50 = vector.extract_strided_slice %21 {offsets = [1, 0], sizes = [1, 8], strides = [1, 1]} : vector<4x8xf32> to vector<1x8xf32>
    %c5 = arith.constant 5 : index
    %51 = memref.load %arg2[%c5] : memref<8xf32, #tpu.memory_space<smem>>
    %52 = vector.broadcast %51 : f32 to vector<1x8xf32>
    %53 = arith.mulf %50, %52 : vector<1x8xf32>
    %54 = arith.addf %49, %53 : vector<1x8xf32>
    %55 = vector.extract_strided_slice %21 {offsets = [2, 0], sizes = [1, 8], strides = [1, 1]} : vector<4x8xf32> to vector<1x8xf32>
    %c6 = arith.constant 6 : index
    %56 = memref.load %arg2[%c6] : memref<8xf32, #tpu.memory_space<smem>>
    %57 = vector.broadcast %56 : f32 to vector<1x8xf32>
    %58 = arith.mulf %55, %57 : vector<1x8xf32>
    %59 = arith.addf %54, %58 : vector<1x8xf32>
    %60 = vector.extract_strided_slice %21 {offsets = [3, 0], sizes = [1, 8], strides = [1, 1]} : vector<4x8xf32> to vector<1x8xf32>
    %c7 = arith.constant 7 : index
    %61 = memref.load %arg2[%c7] : memref<8xf32, #tpu.memory_space<smem>>
    %62 = vector.broadcast %61 : f32 to vector<1x8xf32>
    %63 = arith.mulf %60, %62 : vector<1x8xf32>
    %64 = arith.addf %59, %63 : vector<1x8xf32>
    %c1_14 = arith.constant 1 : index
    %65 = memref.load %arg3[%c1_14] : memref<2xf32, #tpu.memory_space<smem>>
    %66 = vector.broadcast %65 : f32 to vector<1x8xf32>
    %67 = arith.addf %64, %66 : vector<1x8xf32>
    %cst_15 = arith.constant 0.000000e+00 : f32
    %68 = vector.broadcast %cst_15 : f32 to vector<1x8xf32>
    %69 = arith.maximumf %67, %68 : vector<1x8xf32>
    %c0_16 = arith.constant 0 : index
    %70 = memref.load %arg4[%c0_16] : memref<16xf32, #tpu.memory_space<smem>>
    %71 = vector.broadcast %70 : f32 to vector<1x8xf32>
    %72 = arith.mulf %45, %71 : vector<1x8xf32>
    %c1_17 = arith.constant 1 : index
    %73 = memref.load %arg4[%c1_17] : memref<16xf32, #tpu.memory_space<smem>>
    %74 = vector.broadcast %73 : f32 to vector<1x8xf32>
    %75 = arith.mulf %69, %74 : vector<1x8xf32>
    %76 = arith.addf %72, %75 : vector<1x8xf32>
    %c0_18 = arith.constant 0 : index
    %77 = memref.load %arg5[%c0_18] : memref<8xf32, #tpu.memory_space<smem>>
    %78 = vector.broadcast %77 : f32 to vector<1x8xf32>
    %79 = arith.addf %76, %78 : vector<1x8xf32>
    %c2_19 = arith.constant 2 : index
    %80 = memref.load %arg4[%c2_19] : memref<16xf32, #tpu.memory_space<smem>>
    %81 = vector.broadcast %80 : f32 to vector<1x8xf32>
    %82 = arith.mulf %45, %81 : vector<1x8xf32>
    %c3_20 = arith.constant 3 : index
    %83 = memref.load %arg4[%c3_20] : memref<16xf32, #tpu.memory_space<smem>>
    %84 = vector.broadcast %83 : f32 to vector<1x8xf32>
    %85 = arith.mulf %69, %84 : vector<1x8xf32>
    %86 = arith.addf %82, %85 : vector<1x8xf32>
    %c1_21 = arith.constant 1 : index
    %87 = memref.load %arg5[%c1_21] : memref<8xf32, #tpu.memory_space<smem>>
    %88 = vector.broadcast %87 : f32 to vector<1x8xf32>
    %89 = arith.addf %86, %88 : vector<1x8xf32>
    %c4_22 = arith.constant 4 : index
    %90 = memref.load %arg4[%c4_22] : memref<16xf32, #tpu.memory_space<smem>>
    %91 = vector.broadcast %90 : f32 to vector<1x8xf32>
    %92 = arith.mulf %45, %91 : vector<1x8xf32>
    %c5_23 = arith.constant 5 : index
    %93 = memref.load %arg4[%c5_23] : memref<16xf32, #tpu.memory_space<smem>>
    %94 = vector.broadcast %93 : f32 to vector<1x8xf32>
    %95 = arith.mulf %69, %94 : vector<1x8xf32>
    %96 = arith.addf %92, %95 : vector<1x8xf32>
    %c2_24 = arith.constant 2 : index
    %97 = memref.load %arg5[%c2_24] : memref<8xf32, #tpu.memory_space<smem>>
    %98 = vector.broadcast %97 : f32 to vector<1x8xf32>
    %99 = arith.addf %96, %98 : vector<1x8xf32>
    %c6_25 = arith.constant 6 : index
    %100 = memref.load %arg4[%c6_25] : memref<16xf32, #tpu.memory_space<smem>>
    %101 = vector.broadcast %100 : f32 to vector<1x8xf32>
    %102 = arith.mulf %45, %101 : vector<1x8xf32>
    %c7_26 = arith.constant 7 : index
    %103 = memref.load %arg4[%c7_26] : memref<16xf32, #tpu.memory_space<smem>>
    %104 = vector.broadcast %103 : f32 to vector<1x8xf32>
    %105 = arith.mulf %69, %104 : vector<1x8xf32>
    %106 = arith.addf %102, %105 : vector<1x8xf32>
    %c3_27 = arith.constant 3 : index
    %107 = memref.load %arg5[%c3_27] : memref<8xf32, #tpu.memory_space<smem>>
    %108 = vector.broadcast %107 : f32 to vector<1x8xf32>
    %109 = arith.addf %106, %108 : vector<1x8xf32>
    %c8 = arith.constant 8 : index
    %110 = memref.load %arg4[%c8] : memref<16xf32, #tpu.memory_space<smem>>
    %111 = vector.broadcast %110 : f32 to vector<1x8xf32>
    %112 = arith.mulf %45, %111 : vector<1x8xf32>
    %c9 = arith.constant 9 : index
    %113 = memref.load %arg4[%c9] : memref<16xf32, #tpu.memory_space<smem>>
    %114 = vector.broadcast %113 : f32 to vector<1x8xf32>
    %115 = arith.mulf %69, %114 : vector<1x8xf32>
    %116 = arith.addf %112, %115 : vector<1x8xf32>
    %c4_28 = arith.constant 4 : index
    %117 = memref.load %arg5[%c4_28] : memref<8xf32, #tpu.memory_space<smem>>
    %118 = vector.broadcast %117 : f32 to vector<1x8xf32>
    %119 = arith.addf %116, %118 : vector<1x8xf32>
    %c10 = arith.constant 10 : index
    %120 = memref.load %arg4[%c10] : memref<16xf32, #tpu.memory_space<smem>>
    %121 = vector.broadcast %120 : f32 to vector<1x8xf32>
    %122 = arith.mulf %45, %121 : vector<1x8xf32>
    %c11 = arith.constant 11 : index
    %123 = memref.load %arg4[%c11] : memref<16xf32, #tpu.memory_space<smem>>
    %124 = vector.broadcast %123 : f32 to vector<1x8xf32>
    %125 = arith.mulf %69, %124 : vector<1x8xf32>
    %126 = arith.addf %122, %125 : vector<1x8xf32>
    %c5_29 = arith.constant 5 : index
    %127 = memref.load %arg5[%c5_29] : memref<8xf32, #tpu.memory_space<smem>>
    %128 = vector.broadcast %127 : f32 to vector<1x8xf32>
    %129 = arith.addf %126, %128 : vector<1x8xf32>
    %c12 = arith.constant 12 : index
    %130 = memref.load %arg4[%c12] : memref<16xf32, #tpu.memory_space<smem>>
    %131 = vector.broadcast %130 : f32 to vector<1x8xf32>
    %132 = arith.mulf %45, %131 : vector<1x8xf32>
    %c13 = arith.constant 13 : index
    %133 = memref.load %arg4[%c13] : memref<16xf32, #tpu.memory_space<smem>>
    %134 = vector.broadcast %133 : f32 to vector<1x8xf32>
    %135 = arith.mulf %69, %134 : vector<1x8xf32>
    %136 = arith.addf %132, %135 : vector<1x8xf32>
    %c6_30 = arith.constant 6 : index
    %137 = memref.load %arg5[%c6_30] : memref<8xf32, #tpu.memory_space<smem>>
    %138 = vector.broadcast %137 : f32 to vector<1x8xf32>
    %139 = arith.addf %136, %138 : vector<1x8xf32>
    %c14 = arith.constant 14 : index
    %140 = memref.load %arg4[%c14] : memref<16xf32, #tpu.memory_space<smem>>
    %141 = vector.broadcast %140 : f32 to vector<1x8xf32>
    %142 = arith.mulf %45, %141 : vector<1x8xf32>
    %c15 = arith.constant 15 : index
    %143 = memref.load %arg4[%c15] : memref<16xf32, #tpu.memory_space<smem>>
    %144 = vector.broadcast %143 : f32 to vector<1x8xf32>
    %145 = arith.mulf %69, %144 : vector<1x8xf32>
    %146 = arith.addf %142, %145 : vector<1x8xf32>
    %c7_31 = arith.constant 7 : index
    %147 = memref.load %arg5[%c7_31] : memref<8xf32, #tpu.memory_space<smem>>
    %148 = vector.broadcast %147 : f32 to vector<1x8xf32>
    %149 = arith.addf %146, %148 : vector<1x8xf32>
    %150 = arith.negf %79 : vector<1x8xf32>
    %151 = math.exp %150 : vector<1x8xf32>
    %cst_32 = arith.constant 1.000000e+00 : f32
    %152 = vector.broadcast %cst_32 : f32 to vector<1x8xf32>
    %153 = arith.addf %152, %151 : vector<1x8xf32>
    %154 = arith.divf %152, %153 : vector<1x8xf32>
    %155 = arith.negf %89 : vector<1x8xf32>
    %156 = math.exp %155 : vector<1x8xf32>
    %cst_33 = arith.constant 1.000000e+00 : f32
    %157 = vector.broadcast %cst_33 : f32 to vector<1x8xf32>
    %158 = arith.addf %157, %156 : vector<1x8xf32>
    %159 = arith.divf %157, %158 : vector<1x8xf32>
    %160 = arith.negf %99 : vector<1x8xf32>
    %161 = math.exp %160 : vector<1x8xf32>
    %cst_34 = arith.constant 1.000000e+00 : f32
    %162 = vector.broadcast %cst_34 : f32 to vector<1x8xf32>
    %163 = arith.addf %162, %161 : vector<1x8xf32>
    %164 = arith.divf %162, %163 : vector<1x8xf32>
    %165 = arith.negf %109 : vector<1x8xf32>
    %166 = math.exp %165 : vector<1x8xf32>
    %cst_35 = arith.constant 1.000000e+00 : f32
    %167 = vector.broadcast %cst_35 : f32 to vector<1x8xf32>
    %168 = arith.addf %167, %166 : vector<1x8xf32>
    %169 = arith.divf %167, %168 : vector<1x8xf32>
    %170 = tpu.concatenate %154, %159, %164, %169, %119, %129, %139, %149 in 0 : vector<1x8xf32>, vector<1x8xf32>, vector<1x8xf32>, vector<1x8xf32>, vector<1x8xf32>, vector<1x8xf32>, vector<1x8xf32>, vector<1x8xf32> -> vector<8x8xf32>
    %171 = tpu.transpose %170, [1, 0] : vector<8x8xf32> -> vector<8x8xf32>
    %172 = vector.extract_strided_slice %171 {offsets = [0, 0], sizes = [8, 1], strides = [1, 1]} : vector<8x8xf32> to vector<8x1xf32>
    %173 = vector.extract_strided_slice %171 {offsets = [0, 4], sizes = [8, 1], strides = [1, 1]} : vector<8x8xf32> to vector<8x1xf32>
    %c0_36 = arith.constant 0 : index
    %c0_37 = arith.constant 0 : index
    %174 = vector.load %arg1[%c0_36, %c0_37] : memref<8x1024xf32, #tpu.memory_space<vmem>>, vector<8x256xf32>
    %175 = vector.broadcast %172 : vector<8x1xf32> to vector<8x256xf32>
    %176 = arith.mulf %175, %174 : vector<8x256xf32>
    %177 = vector.broadcast %173 : vector<8x1xf32> to vector<8x256xf32>
    %178 = arith.addf %176, %177 : vector<8x256xf32>
    %c0_38 = arith.constant 0 : index
    %c0_39 = arith.constant 0 : index
    %179 = vector.load %arg6[%c0_38, %c0_39] : memref<8x1024xf32, #tpu.memory_space<vmem>>, vector<8x256xf32>
    tpu.vector_store %arg6[%c0_38, %c0_39], %178 {strides = array<i32>} : memref<8x1024xf32, #tpu.memory_space<vmem>>, vector<8x256xf32>,
    %180 = vector.extract_strided_slice %171 {offsets = [0, 1], sizes = [8, 1], strides = [1, 1]} : vector<8x8xf32> to vector<8x1xf32>
    %181 = vector.extract_strided_slice %171 {offsets = [0, 5], sizes = [8, 1], strides = [1, 1]} : vector<8x8xf32> to vector<8x1xf32>
    %c0_40 = arith.constant 0 : index
    %c256_41 = arith.constant 256 : index
    %182 = vector.load %arg1[%c0_40, %c256_41] : memref<8x1024xf32, #tpu.memory_space<vmem>>, vector<8x256xf32>
    %183 = vector.broadcast %180 : vector<8x1xf32> to vector<8x256xf32>
    %184 = arith.mulf %183, %182 : vector<8x256xf32>
    %185 = vector.broadcast %181 : vector<8x1xf32> to vector<8x256xf32>
    %186 = arith.addf %184, %185 : vector<8x256xf32>
    %c0_42 = arith.constant 0 : index
    %c256_43 = arith.constant 256 : index
    %187 = vector.load %arg6[%c0_42, %c256_43] : memref<8x1024xf32, #tpu.memory_space<vmem>>, vector<8x256xf32>
    tpu.vector_store %arg6[%c0_42, %c256_43], %186 {strides = array<i32>} : memref<8x1024xf32, #tpu.memory_space<vmem>>, vector<8x256xf32>,
    %188 = vector.extract_strided_slice %171 {offsets = [0, 2], sizes = [8, 1], strides = [1, 1]} : vector<8x8xf32> to vector<8x1xf32>
    %189 = vector.extract_strided_slice %171 {offsets = [0, 6], sizes = [8, 1], strides = [1, 1]} : vector<8x8xf32> to vector<8x1xf32>
    %c0_44 = arith.constant 0 : index
    %c512_45 = arith.constant 512 : index
    %190 = vector.load %arg1[%c0_44, %c512_45] : memref<8x1024xf32, #tpu.memory_space<vmem>>, vector<8x256xf32>
    %191 = vector.broadcast %188 : vector<8x1xf32> to vector<8x256xf32>
    %192 = arith.mulf %191, %190 : vector<8x256xf32>
    %193 = vector.broadcast %189 : vector<8x1xf32> to vector<8x256xf32>
    %194 = arith.addf %192, %193 : vector<8x256xf32>
    %c0_46 = arith.constant 0 : index
    %c512_47 = arith.constant 512 : index
    %195 = vector.load %arg6[%c0_46, %c512_47] : memref<8x1024xf32, #tpu.memory_space<vmem>>, vector<8x256xf32>
    tpu.vector_store %arg6[%c0_46, %c512_47], %194 {strides = array<i32>} : memref<8x1024xf32, #tpu.memory_space<vmem>>, vector<8x256xf32>,
    %196 = vector.extract_strided_slice %171 {offsets = [0, 3], sizes = [8, 1], strides = [1, 1]} : vector<8x8xf32> to vector<8x1xf32>
    %197 = vector.extract_strided_slice %171 {offsets = [0, 7], sizes = [8, 1], strides = [1, 1]} : vector<8x8xf32> to vector<8x1xf32>
    %c0_48 = arith.constant 0 : index
    %c768_49 = arith.constant 768 : index
    %198 = vector.load %arg1[%c0_48, %c768_49] : memref<8x1024xf32, #tpu.memory_space<vmem>>, vector<8x256xf32>
    %199 = vector.broadcast %196 : vector<8x1xf32> to vector<8x256xf32>
    %200 = arith.mulf %199, %198 : vector<8x256xf32>
    %201 = vector.broadcast %197 : vector<8x1xf32> to vector<8x256xf32>
    %202 = arith.addf %200, %201 : vector<8x256xf32>
    %c0_50 = arith.constant 0 : index
    %c768_51 = arith.constant 768 : index
    %203 = vector.load %arg6[%c0_50, %c768_51] : memref<8x1024xf32, #tpu.memory_space<vmem>>, vector<8x256xf32>
    tpu.vector_store %arg6[%c0_50, %c768_51], %202 {strides = array<i32>} : memref<8x1024xf32, #tpu.memory_space<vmem>>, vector<8x256xf32>,
    return
  }
  func.func @transform_0(%arg0: i32) -> (i32, i32) {
    %c0_i32 = arith.constant 0 : i32
    %c0_i32_0 = arith.constant 0 : i32
    return %arg0, %c0_i32 : i32, i32
  }
  func.func @transform_1(%arg0: i32) -> i32 {
    %c0_i32 = arith.constant 0 : i32
    %c0_i32_0 = arith.constant 0 : i32
    return %c0_i32 : i32
  }
  func.func @transform_2(%arg0: i32) -> i32 {
    %c0_i32 = arith.constant 0 : i32
    %c0_i32_0 = arith.constant 0 : i32
    return %c0_i32 : i32
  }
  func.func @transform_3(%arg0: i32) -> i32 {
    %c0_i32 = arith.constant 0 : i32
    %c0_i32_0 = arith.constant 0 : i32
    return %c0_i32 : i32
  }
  func.func @transform_4(%arg0: i32) -> i32 {
    %c0_i32 = arith.constant 0 : i32
    %c0_i32_0 = arith.constant 0 : i32
    return %c0_i32 : i32
  }
  func.func @transform_5(%arg0: i32) -> (i32, i32) {
    %c0_i32 = arith.constant 0 : i32
    %c0_i32_0 = arith.constant 0 : i32
    return %arg0, %c0_i32 : i32, i32
  }
}

</mosaic_0001>

<bundles_post_ra>
// kernel: tpu_custom_call.1
= control target key start
LH: loop header
LB: loop body
LE: loop exit
PB: predicated region body
PF: predicated region fallthrough
CT: control target
= control target key end

     0   :  { %10 = vsyncpa [#allocation3], 0  ;;  %s944_s0 = inlined_call_operand.hbm [shape: f32[8,1024], index: 0, kind: input, shape index: {}]   ;;  %s945_s1 = inlined_call_operand.hbm [shape: f32[8], index: 1, kind: input, shape index: {}]   ;;  %s946_s2 = inlined_call_operand.vmem [shape: f32[2], index: 2, kind: input, shape index: {}]   ;;  %s947_s3 = inlined_call_operand.vmem [shape: f32[16], index: 3, kind: input, shape index: {}]   ;;  %s948_s4 = inlined_call_operand.vmem [shape: f32[8], index: 4, kind: input, shape index: {}]   ;;  %s949_s5 = inlined_call_operand.hbm [shape: f32[8,1024], index: 5, kind: output, shape index: {}]  }
   0x1   :  { %11 = vsyncpa [#allocation5], 0 }
   0x2   :  { %12 = vsyncpa [#allocation6], 0 }
   0x3   :  { %13 = vsyncpa [#allocation10], 0  ;;  %s49_s20 = sshll.u32 %s947_s3, 4  ;;  %s50_s20 = int_to_ptr.vmem [resolvable:$true] %s49_s20 }
   0x4   :  { %14 = vsyncpa [#allocation4], 0  ;;  %s20_s23 = sshll.u32 %s944_s0, 4  ;;  %s697_s24 = smov [#allocation9]   ;;  %s21_s23 = int_to_ptr.hbm [resolvable:$true] %s20_s23 }
   0x5   :  { %52 = dma.vmem_to_smem %s50_s20, 16, %s697_s24, [#allocation10]  }
   0x6   :  { %s698_s25 = smov [#allocation2]   ;;  %s31_s29 = sshll.u32 %s945_s1, 4  ;;  %s32_s29 = int_to_ptr.hbm [resolvable:$true] %s31_s29 }
   0x7   :  { %s22_s26 = sshll.u32 %s698_s25, 4  ;;  %s40_s6 = sshll.u32 %s946_s2, 4  ;;  %s23_s26 = int_to_ptr.vmem [resolvable:$true] %s22_s26  ;;  %s41_s6 = int_to_ptr.vmem [resolvable:$true] %s40_s6 }
   0x8   :  { %25 = dma.hbm_to_vmem [thread:$0]  %s21_s23, 1024, %s23_s26, [#allocation3]  }
   0x9   :  { %s699_s7 = smov [#allocation7]   ;;  %s700_s0 = smov [#allocation8]  }
   0xa   :  { %34 = dma.hbm_to_smem %s32_s29, 16, %s699_s7, [#allocation5]  }
   0xb   :  { %43 = dma.vmem_to_smem %s41_s6, 16, %s700_s0, [#allocation6]  }
   0xc   :  { %s58_s10 = sshll.u32 %s948_s4, 4  ;;  %s701_s11 = smov [#allocation11]   ;;  %s59_s10 = int_to_ptr.vmem [resolvable:$true] %s58_s10 }
   0xd   :  { %61 = dma.vmem_to_smem %s59_s10, 16, %s701_s11, [#allocation10]  }
   0xe   :  { %687 = dma.done.wait [#allocation3], 1024  }
   0xf   :  { %688 = vsyncadd [#allocation3], 4294966272 }
  0x10   :  { %689 = dma.done.wait [#allocation5], 16  }
  0x11   :  { %690 = vsyncadd [#allocation5], 4294967280 }
  0x12   :  { %691 = dma.done.wait [#allocation6], 16  }
  0x13   :  { %692 = vsyncadd [#allocation6], 4294967280 }
  0x14   :  { %693 = dma.done.wait [#allocation10], 32  }
  0x15   :  { %694 = vsyncadd [#allocation10], 4294967264 }
  0x16   :  { %82 = sfence }
  0x17   :  { %v757_v0 = vld [vmem:[#allocation2] sm:$0xff]  ;;  %v759_v1 = vld [vmem:[#allocation2 + $0x8] sm:$0xff]  ;;  %v769_v6 = vld [vmem:[#allocation2 + $0x10] sm:$0xff]  ;;  %v702_v12 = vmov 256.0   ;;  %vm114_vm1 = vcmask 7168   ;;  %vm116_vm2 = vcmask 15360  }
  0x18   :  { %v761_v2 = vld [vmem:[#allocation2 + $0x20] sm:$0xff]  ;;  %v85_v3 = vadd.f32 %v759_v1, %v757_v0  ;;  %v765_v4 = vld [vmem:[#allocation2 + $0x28] sm:$0xff]  ;;  %v771_v7 = vld [vmem:[#allocation2 + $0x18] sm:$0xff]  ;;  %573 = vrcp.f32 %v702_v12  ;;  %vm118_vm3 = vcmask 23552   ;;  %s152_s1 = sld [smem:[#allocation7]]  ;;  %vm385_vm5 = vcmask 1040384  }
  0x19   :  { %v104_v5 = vadd.f32 %v765_v4, %v761_v2  ;;  %v773_v8 = vld [vmem:[#allocation2 + $0x30] sm:$0xff]  ;;  %v775_v9 = vld [vmem:[#allocation2 + $0x38] sm:$0xff]  ;;  %v98_v10 = vadd.f32 %v771_v7, %v769_v6  ;;  %s514_s2 = sld [smem:[#allocation7 + $0x1]]  ;;  %vm387_vm10 = vcmask 1041408  }
  0x1a   :  { %86 = vadd.xlane.f32.xlu0 %v85_v3  ;;  %v110_v11 = vadd.f32 %v775_v9, %v773_v8  ;;  %s515_s4 = sld [smem:[#allocation7 + $0x2]] }
  0x1b   :  { %105 = vadd.xlane.f32.xlu1 %v104_v5  ;;  %s516_s12 = sld [smem:[#allocation7 + $0x3]] }
  0x1c   :  { %s518_s13 = sld [smem:[#allocation7 + $0x5]] }
  0x1d   :  { %s519_s14 = sld [smem:[#allocation7 + $0x6]] }
  0x1e   :  { %v574_v13 = vpop.eup %573  ;;  %s517_s15 = sld [smem:[#allocation7 + $0x4]]  ;;  %v153_v34 = vstv %s152_s1 }
  0x1f   :  { %v89_v14 = vmul.f32 256.0, %v574_v13  ;;  %vm93_vm0 = vweird.f32 %v574_v13  ;;  %s520_s16 = sld [smem:[#allocation7 + $0x7]]  ;;  %v156_v30 = vstv %s514_s2 }
  0x20   :  { %s781_s17 = sld [smem:[#allocation8]]  ;;  %v163_v31 = vstv %s515_s4 }
  0x21   :  { %v90_v15 = vsub.f32 1.0, %v89_v14  ;;  %s783_s18 = sld [smem:[#allocation8 + $0x1]]  ;;  %v170_v35 = vstv %s516_s12 }
  0x22   :  { %99 = vadd.xlane.f32.xlu0 %v98_v10  ;;  %s785_s19 = sld [smem:[#allocation9]]  ;;  %v184_v32 = vstv %s518_s13  ;;  %s711_s13 = smov [#allocation12]  }
  0x23   :  { %111 = vadd.xlane.f32.xlu1 %v110_v11  ;;  %v91_v16 = vmul.f32 %v574_v13, %v90_v15  ;;  %v191_v33 = vstv %s519_s14  ;;  %s787_s20 = sld [smem:[#allocation9 + $0x1]]  ;;  %s499_s14 = sshll.u32 %s711_s13, 4  ;;  %s500_s14 = int_to_ptr.vmem [resolvable:$true] %s499_s14 }
  0x24   :  { %s789_s21 = sld [smem:[#allocation9 + $0x2]]  ;;  %v181_v37 = vstv %s517_s15 }
  0x25   :  { %v92_v19 = vadd.f32 %v574_v13, %v91_v16  ;;  %v198_v38 = vstv %s520_s16  ;;  %s791_s22 = sld [smem:[#allocation9 + $0x3]] }
  0x26   :  { %s793_s23 = sld [smem:[#allocation9 + $0x4]]  ;;  %v177_v55 = vstv %s781_s17  ;;  %s501_s17 = sshll.u32 %s949_s5, 4  ;;  %s502_s17 = int_to_ptr.hbm [resolvable:$true] %s501_s17 }
  0x27   :  { %v94_v20 = vsel %vm93_vm0, %v574_v13, %v92_v19  ;;  %s795_s24 = sld [smem:[#allocation9 + $0x5]]  ;;  %v205_v58 = vstv %s783_s18 }
  0x28   :  { %s797_s25 = sld [smem:[#allocation9 + $0x6]]  ;;  %v209_v62 = vstv %s785_s19 }
  0x29   :  { %s799_s26 = sld [smem:[#allocation9 + $0x7]]  ;;  %v212_v63 = vstv %s787_s20 }
  0x2a   :  { %s801_s27 = sld [smem:[#allocation11]]  ;;  %v219_v5 = vstv %s789_s21 }
  0x2b   :  { %s803_s28 = sld [smem:[#allocation11 + $0x1]]  ;;  %v222_v13 = vstv %s791_s22 }
  0x2c   :  { %s806_s29 = sld [smem:[#allocation11 + $0x2]]  ;;  %v229_v10 = vstv %s793_s23 }
  0x2d   :  { %s809_s30 = sld [smem:[#allocation11 + $0x3]]  ;;  %v232_v14 = vstv %s795_s24 }
  0x2e   :  { %v239_v11 = vstv %s797_s25  ;;  %s835_s3 = sld [smem:[#allocation9 + $0x8]] }
  0x2f   :  { %v242_v15 = vstv %s799_s26  ;;  %s837_s6 = sld [smem:[#allocation9 + $0x9]] }
  0x30   :  { %s839_s7 = sld [smem:[#allocation9 + $0xa]] }
  0x31   :  { %s841_s0 = sld [smem:[#allocation9 + $0xb]] }
  0x32   :  { %s843_s8 = sld [smem:[#allocation9 + $0xc]] }
  0x33   :  { %s845_s9 = sld [smem:[#allocation9 + $0xd]] }
  0x34   :  { %s847_s10 = sld [smem:[#allocation9 + $0xe]] }
  0x35   :  { %s849_s11 = sld [smem:[#allocation9 + $0xf]] }
  0x36   :  { %s851_s1 = sld [smem:[#allocation11 + $0x4]] }
  0x37   :  { %s857_s2 = sld [smem:[#allocation11 + $0x5]] }
  0x38   :  { %s859_s4 = sld [smem:[#allocation11 + $0x6]] }
  0x39   :  { %s865_s12 = sld [smem:[#allocation11 + $0x7]] }
  0x8d   :  { %v87_v17 = vpop.xlane.xlu0 %86 }
  0x8e   :  { %v106_v18 = vpop.xlane.xlu1 %105  ;;  %v95_v22 = vmul.f32 %v94_v20, %v87_v17 }
  0x8f   :  { %v107_v25 = vmul.f32 %v106_v18, %v94_v20 }
  0x95   :  { %v100_v21 = vpop.xlane.xlu0 %99 }
  0x96   :  { %v101_v23 = vmul.f32 %v100_v21, %v94_v20  ;;  %v112_v24 = vpop.xlane.xlu1 %111 }
  0x97   :  { %v113_v26 = vmul.f32 %v112_v24, %v94_v20 }
  0x98   :  { %v115_v27 = vsel %vm114_vm1, %v95_v22, %v101_v23 }
  0x99   :  { %v117_v28 = vsel %vm116_vm2, %v115_v27, %v107_v25  ;;  %v216_v25 = vstv %s801_s27  ;;  %v236_v27 = vstv %s806_s29 }
  0x9a   :  { %v119_v29 = vsel %vm118_vm3, %v117_v28, %v113_v26  ;;  %v226_v26 = vstv %s803_s28  ;;  %v246_v28 = vstv %s809_s30 }
  0x9b   :  { %120 = vxpose.xlu2.b32.start.end [1/1] (short) (narrow) %v119_v29, 8 }
 0x134   :  { %v136_v36 = vpop.trf.xlu2 }
 0x135   :  { %v157_v39 = vmul.f32 %v156_v30, %v136_v36  ;;  %v164_v40 = vmul.f32 %v163_v31, %v136_v36  ;;  %v185_v41 = vmul.f32 %v184_v32, %v136_v36  ;;  %v192_v42 = vmul.f32 %v191_v33, %v136_v36 }
 0x136   :  { %v154_v43 = vmul.f32 %v153_v34, %v136_v36  ;;  %v171_v45 = vmul.f32 %v170_v35, %v136_v36  ;;  %v182_v46 = vmul.f32 %v181_v37, %v136_v36  ;;  %v199_v48 = vmul.f32 %v198_v38, %v136_v36 }
 0x137   :  { %v159_v44 = vrot.slane %v157_v39, 1  ;;  %v187_v47 = vrot.slane %v185_v41, 1  ;;  %v166_v50 = vrot.slane %v164_v40, 2  ;;  %v194_v52 = vrot.slane %v192_v42, 2 }
 0x138   :  { %v173_v54 = vrot.slane %v171_v45, 3  ;;  %v201_v57 = vrot.slane %v199_v48, 3  ;;  %v249_v41 = vstv %s835_s3  ;;  %v252_v42 = vstv %s837_s6 }
 0x139   :  { %v161_v49 = vadd.f32 %v159_v44, %v154_v43  ;;  %v189_v51 = vadd.f32 %v187_v47, %v182_v46  ;;  %v259_v44 = vstv %s839_s7  ;;  %v262_v45 = vstv %s841_s0 }
 0x13a   :  { %v703_v48 = vmov 1  }
 0x13b   :  { %v168_v53 = vadd.f32 %v166_v50, %v161_v49  ;;  %v196_v56 = vadd.f32 %v194_v52, %v189_v51  ;;  %565 = vset.pattern.permute.xlu1 %v703_v48  ;;  %v704_v49 = vmov 0  }
 0x13c   :  { %564 = vset.pattern.permute.xlu0 %v704_v49 }
 0x13d   :  { %v175_v59 = vadd.f32 %v173_v54, %v168_v53  ;;  %v203_v60 = vadd.f32 %v201_v57, %v196_v56  ;;  %v269_v57 = vstv %s843_s8 }
 0x13f   :  { %v178_v61 = vadd.f32 %v177_v55, %v175_v59  ;;  %v206_v3 = vadd.f32 %v205_v58, %v203_v60  ;;  %v272_v58 = vstv %s845_s9  ;;  %v279_v59 = vstv %s847_s10 }
 0x140   :  { %v282_v60 = vstv %s849_s11 }
 0x141   :  { %v816_v12 = vmax.f32 %v178_v61, 0.0  ;;  %v821_v16 = vmax.f32 %v206_v3, 0.0  ;;  %v256_v3 = vstv %s851_s1 }
 0x143   :  { %v210_v17 = vmul.f32 %v209_v62, %v816_v12  ;;  %v220_v18 = vmul.f32 %v219_v5, %v816_v12  ;;  %v230_v19 = vmul.f32 %v229_v10, %v816_v12  ;;  %v240_v20 = vmul.f32 %v239_v11, %v816_v12 }
 0x144   :  { %v213_v21 = vmul.f32 %v212_v63, %v821_v16  ;;  %v223_v22 = vmul.f32 %v222_v13, %v821_v16  ;;  %v233_v23 = vmul.f32 %v232_v14, %v821_v16  ;;  %v243_v24 = vmul.f32 %v242_v15, %v821_v16 }
 0x145   :  { %v250_v51 = vmul.f32 %v249_v41, %v816_v12  ;;  %v253_v52 = vmul.f32 %v252_v42, %v821_v16  ;;  %v260_v55 = vmul.f32 %v259_v44, %v816_v12  ;;  %v263_v56 = vmul.f32 %v262_v45, %v821_v16 }
 0x146   :  { %v214_v29 = vadd.f32 %v213_v21, %v210_v17  ;;  %v224_v30 = vadd.f32 %v223_v22, %v220_v18  ;;  %v234_v31 = vadd.f32 %v233_v23, %v230_v19  ;;  %v244_v32 = vadd.f32 %v243_v24, %v240_v20 }
 0x147   :  { %v254_v63 = vadd.f32 %v253_v52, %v250_v51  ;;  %v264_v5 = vadd.f32 %v263_v56, %v260_v55  ;;  %v270_v10 = vmul.f32 %v269_v57, %v816_v12  ;;  %v273_v11 = vmul.f32 %v272_v58, %v821_v16 }
 0x148   :  { %v217_v33 = vadd.f32 %v216_v25, %v214_v29  ;;  %v227_v34 = vadd.f32 %v226_v26, %v224_v30  ;;  %v237_v35 = vadd.f32 %v236_v27, %v234_v31  ;;  %v247_v36 = vadd.f32 %v246_v28, %v244_v32 }
 0x149   :  { %v266_v13 = vstv %s857_s2  ;;  %v280_v14 = vmul.f32 %v279_v59, %v816_v12  ;;  %v283_v15 = vmul.f32 %v282_v60, %v821_v16  ;;  %v886_v19 = vadd.f32 %v256_v3, %v254_v63 }
 0x14a   :  { %v544_v37 = vmul.f32 -1.442695, %v217_v33  ;;  %v545_v38 = vmul.f32 -1.442695, %v227_v34  ;;  %v546_v39 = vmul.f32 -1.442695, %v237_v35  ;;  %v276_v20 = vstv %s859_s4 }
 0x14b   :  { %v547_v40 = vmul.f32 -1.442695, %v247_v36  ;;  %v286_v21 = vstv %s865_s12  ;;  %v891_v23 = vadd.f32 %v266_v13, %v264_v5  ;;  %v274_v24 = vadd.f32 %v273_v11, %v270_v10 }
 0x14c   :  { %575 = vpow2.f32 %v544_v37  ;;  %v284_v27 = vadd.f32 %v283_v15, %v280_v14  ;;  %v374_v15 = vrot.slane %v886_v19, 4  ;;  %v706_v19 = vmov 3  }
 0x14d   :  { %577 = vpow2.f32 %v545_v38 }
 0x14e   :  { %579 = vpow2.f32 %v546_v39 }
 0x14f   :  { %581 = vpow2.f32 %v547_v40 }
 0x152   :  { %v576_v43 = vpop.eup %575 }
 0x153   :  { %v578_v46 = vpop.eup %577  ;;  %v861_v47 = vadd.f32 1.0, %v576_v43 }
 0x154   :  { %v580_v50 = vpop.eup %579  ;;  %v310_v53 = vadd.f32 1.0, %v578_v46 }
 0x155   :  { %v582_v54 = vpop.eup %581  ;;  %583 = vrcp.f32 %v861_v47  ;;  %v874_v61 = vadd.f32 1.0, %v580_v50  ;;  %v301_v25 = vand.u32 2147483647, %v861_v47  ;;  %vm297_vm4 = vweird.f32 %v861_v47 }
 0x156   :  { %585 = vrcp.f32 %v310_v53  ;;  %v876_v62 = vadd.f32 1.0, %v582_v54  ;;  %v320_v28 = vand.u32 2147483647, %v310_v53  ;;  %v322_v16 = vand.u32 2147483648, %v310_v53 }
 0x157   :  { %587 = vrcp.f32 %v874_v61  ;;  %v303_v30 = vand.u32 2147483648, %v861_v47  ;;  %vm316_vm7 = vweird.f32 %v310_v53  ;;  %vm897_vm8 = vcmp.eq.f32.partialorder %v301_v25, 8.507059e+37 }
 0x158   :  { %589 = vrcp.f32 %v876_v62  ;;  %vm902_vm11 = vcmp.eq.f32.partialorder %v320_v28, 8.507059e+37  ;;  %v323_v40 = vor.u32 1.1754944e-38, %v322_v16  ;;  %v339_v44 = vand.u32 2147483647, %v874_v61 }
 0x159   :  { %v341_v45 = vand.u32 2147483648, %v874_v61  ;;  %v358_v49 = vand.u32 2147483647, %v876_v62  ;;  %v360_v50 = vand.u32 2147483648, %v876_v62  ;;  %v304_v54 = vor.u32 1.1754944e-38, %v303_v30 }
 0x15a   :  { %vm335_vm0 = vweird.f32 %v874_v61  ;;  %vm354_vm2 = vweird.f32 %v876_v62  ;;  %vm340_vm3 = vcmp.eq.f32.partialorder %v339_v44, 8.507059e+37  ;;  %v707_v16 = vmov 5  }
 0x15b   :  { %v584_v17 = vpop.eup %583  ;;  %v361_v63 = vor.u32 1.1754944e-38, %v360_v50  ;;  %v710_v30 = vmov 6  }
 0x15c   :  { %v586_v18 = vpop.eup %585  ;;  %v293_v22 = vmul.f32 %v584_v17, %v861_v47  ;;  %vm298_vm6 = vweird.f32 %v584_v17 }
 0x15d   :  { %v312_v26 = vmul.f32 %v586_v18, %v310_v53  ;;  %v588_v29 = vpop.eup %587  ;;  %vm317_vm9 = vweird.f32 %v586_v18  ;;  %vm908_vm12 = vmor %vm297_vm4, %vm298_vm6  ;;  %v342_v53 = vor.u32 1.1754944e-38, %v341_v45  ;;  %vm359_vm6 = vcmp.eq.f32.partialorder %v358_v49, 8.507059e+37 }
 0x15e   :  { %v294_v12 = vsub.f32 1.0, %v293_v22  ;;  %v590_v32 = vpop.eup %589  ;;  %v331_v34 = vmul.f32 %v588_v29, %v874_v61  ;;  %vm318_vm13 = vmor %vm316_vm7, %vm317_vm9  ;;  %vm336_vm14 = vweird.f32 %v588_v29  ;;  %v277_v61 = vadd.f32 %v276_v20, %v274_v24 }
 0x15f   :  { %v313_v31 = vsub.f32 1.0, %v312_v26  ;;  %v350_v37 = vmul.f32 %v590_v32, %v876_v62  ;;  %vm355_vm15 = vweird.f32 %v590_v32  ;;  %vm337_vm1 = vmor %vm335_vm0, %vm336_vm14  ;;  %vm389_vm7 = vcmask 1042432  }
 0x160   :  { %v295_v33 = vmul.f32 %v584_v17, %v294_v12  ;;  %v332_v41 = vsub.f32 1.0, %v331_v34  ;;  %vm356_vm4 = vmor %vm354_vm2, %vm355_vm15  ;;  %v287_v62 = vadd.f32 %v286_v21, %v284_v27  ;;  %vm391_vm9 = vcmask 1043456  }
 0x161   :  { %v314_v36 = vmul.f32 %v586_v18, %v313_v31  ;;  %v351_v46 = vsub.f32 1.0, %v350_v37  ;;  %v380_v25 = vrot.slane %v277_v61, 2  ;;  %v705_v21 = vmov 2  }
 0x162   :  { %v296_v38 = vadd.f32 %v584_v17, %v295_v33  ;;  %v333_v48 = vmul.f32 %v588_v29, %v332_v41  ;;  %v383_v20 = vrot.slane %v287_v62, 1 }
 0x163   :  { %v315_v43 = vadd.f32 %v586_v18, %v314_v36  ;;  %v352_v52 = vmul.f32 %v590_v32, %v351_v46 }
 0x164   :  { %v300_v47 = vsel %vm908_vm12, %v584_v17, %v296_v38  ;;  %v334_v56 = vadd.f32 %v588_v29, %v333_v48 }
 0x165   :  { %v319_v51 = vsel %vm318_vm13, %v586_v18, %v315_v43  ;;  %v353_v57 = vadd.f32 %v590_v32, %v352_v52  ;;  %v305_v59 = vsel %vm897_vm8, %v304_v54, %v300_v47  ;;  %vm393_vm8 = vcmask 1044480  }
 0x166   :  { %v324_v55 = vsel %vm902_vm11, %v323_v40, %v319_v51  ;;  %v338_v60 = vsel %vm337_vm1, %v588_v29, %v334_v56  ;;  %v377_v18 = vrot.slane %v891_v23, 3  ;;  %vm395_vm11 = vcmask 1045504  }
 0x167   :  { %v365_v58 = vrot.slane %v324_v55, 7  ;;  %v343_v3 = vsel %vm340_vm3, %v342_v53, %v338_v60  ;;  %v357_v5 = vsel %vm356_vm4, %v590_v32, %v353_v57  ;;  %v708_v23 = vmov 4  }
 0x168   :  { %v362_v11 = vsel %vm359_vm6, %v361_v63, %v357_v5  ;;  %v368_v13 = vrot.slane %v343_v3, 6  ;;  %v709_v29 = vmov 7  }
 0x169   :  { %v386_v10 = vsel %vm385_vm5, %v305_v59, %v365_v58  ;;  %v371_v14 = vrot.slane %v362_v11, 5  ;;  %vm397_vm5 = vcmask 1046528  }
 0x16a   :  { %v388_v17 = vsel %vm387_vm10, %v386_v10, %v368_v13 }
 0x16b   :  { %v390_v22 = vsel %vm389_vm7, %v388_v17, %v371_v14 }
 0x16c   :  { %v392_v26 = vsel %vm391_vm9, %v390_v22, %v374_v15 }
 0x16d   :  { %v394_v24 = vsel %vm393_vm8, %v392_v26, %v377_v18 }
 0x16e   :  { %v396_v12 = vsel %vm395_vm11, %v394_v24, %v380_v25 }
 0x16f   :  { %v398_v28 = vsel %vm397_vm5, %v396_v12, %v383_v20 }
 0x170   :  { %399 = vxpose.xlu2.b32.start.end [1/1] (short) (narrow) %v398_v28, 8 }
 0x1d2   :  { %566 = vset.pattern.permute.xlu2 %v705_v21 }
 0x209   :  { %v415_v27 = vpop.trf.xlu2 }
 0x20a   :  { %465 = vperm.xlu2 %566, %v415_v27   ;;  %449 = vperm.xlu1 %565, %v415_v27  }
 0x20b   :  { %433 = vperm.xlu0 %564, %v415_v27  }
 0x212   :  { %567 = vset.pattern.permute.xlu1 %v706_v19 }
 0x213   :  { %569 = vset.pattern.permute.xlu0 %v707_v16  ;;  %481 = vperm.xlu1 %567, %v415_v27  }
 0x214   :  { %455 = vperm.xlu0 %569, %v415_v27  }
 0x21b   :  { %568 = vset.pattern.permute.xlu1 %v708_v23 }
 0x21c   :  { %439 = vperm.xlu1 %568, %v415_v27   ;;  %572 = vset.pattern.permute.xlu0 %v709_v29 }
 0x224   :  { %570 = vset.pattern.permute.xlu1 %v710_v30 }
 0x225   :  { %471 = vperm.xlu1 %570, %v415_v27  }
 0x22d   :  { %571 = vset.pattern.permute.xlu1 %v709_v29 }
 0x22e   :  { %487 = vperm.xlu1 %571, %v415_v27  }
 0x264   :  { %v466_v44 = vpop.permute.xlu2 %465 }
 0x27c   :  { %v450_v31 = vpop.permute.xlu1 %449 }
 0x27d   :  { %v434_v32 = vpop.permute.xlu0 %433  ;;  %v452_v33 = vmul.f32 %v450_v31, %v769_v6  ;;  %v453_v34 = vmul.f32 %v450_v31, %v771_v7  ;;  %v468_v6 = vmul.f32 %v466_v44, %v761_v2  ;;  %v469_v7 = vmul.f32 %v466_v44, %v765_v4 }
 0x27e   :  { %v436_v39 = vmul.f32 %v434_v32, %v757_v0  ;;  %v437_v40 = vmul.f32 %v434_v32, %v759_v1 }
 0x285   :  { %v482_v35 = vpop.permute.xlu1 %481 }
 0x286   :  { %v456_v36 = vpop.permute.xlu0 %455  ;;  %v484_v49 = vmul.f32 %v482_v35, %v773_v8  ;;  %v485_v0 = vmul.f32 %v482_v35, %v775_v9 }
 0x287   :  { %v458_v37 = vadd.f32 %v456_v36, %v452_v33  ;;  %v459_v38 = vadd.f32 %v456_v36, %v453_v34 }
 0x289   :  { %460 = vst [vmem:[#allocation12 + $0x10] sm:$0xff] %v458_v37 }
 0x28a   :  { %461 = vst [vmem:[#allocation12 + $0x18] sm:$0xff] %v459_v38 }
 0x28e   :  { %v440_v41 = vpop.permute.xlu1 %439 }
 0x28f   :  { %v442_v42 = vadd.f32 %v440_v41, %v436_v39  ;;  %v443_v43 = vadd.f32 %v440_v41, %v437_v40 }
 0x291   :  { %444 = vst [vmem:[#allocation12] sm:$0xff] %v442_v42 }
 0x292   :  { %445 = vst [vmem:[#allocation12 + $0x8] sm:$0xff] %v443_v43 }
 0x297   :  { %v472_v45 = vpop.permute.xlu1 %471 }
 0x298   :  { %v474_v46 = vadd.f32 %v472_v45, %v468_v6  ;;  %v475_v48 = vadd.f32 %v472_v45, %v469_v7 }
 0x29a   :  { %476 = vst [vmem:[#allocation12 + $0x20] sm:$0xff] %v474_v46 }
 0x29b   :  { %477 = vst [vmem:[#allocation12 + $0x28] sm:$0xff] %v475_v48 }
 0x2a0   :  { %v488_v1 = vpop.permute.xlu1 %487 }
 0x2a1   :  { %v490_v50 = vadd.f32 %v488_v1, %v484_v49  ;;  %v491_v2 = vadd.f32 %v488_v1, %v485_v0 }
 0x2a3   :  { %492 = vst [vmem:[#allocation12 + $0x30] sm:$0xff] %v490_v50 }
 0x2a4   :  { %493 = vst [vmem:[#allocation12 + $0x38] sm:$0xff] %v491_v2 }
 0x2a5   :  { %504 = dma.vmem_to_hbm [thread:$0]  %s500_s14, 1024, %s502_s17, [#allocation4]  }
 0x2a6   :  { %695 = dma.done.wait [#allocation4], 1024  }
 0x2a7   :  { %696 = vsyncadd [#allocation4], 4294966272 }
 0x2a8   :  { %509 = vsyncpa [#allocation3], 1 }
 0x2a9   :  { %510 = vsyncpa [#allocation4], 1 }
 0x2aa   :  { %511 = vsyncpa [#allocation5], 1 }
 0x2ab   :  { %512 = vsyncpa [#allocation6], 1 }
 0x2ac   :  { %513 = vsyncpa [#allocation10], 1 }

</bundles_post_ra>
